<compile_context>
chip_gen: v6e
topology: v6e:2x2x1
jax: 0.10.0
libtpu: 0.0.40
codegen_flags: <defaults>
</compile_context>

<pallas_src>
import functools
import math

import jax
import jax.numpy as jnp
from jax.experimental import pallas as pl
from jax.experimental.pallas import tpu as pltpu

LANE = 128  # all internal channel dims are zero-padded to the 128-lane width


def _round_up(x, m):
    return ((x + m - 1) // m) * m


def _cparams(block_bytes, ndims=1):
    """Per-kernel scoped-VMEM limit from actual block bytes (double buffering
    + headroom), capped at 64 MiB so v7x is never over-reserved."""
    lim = int(max(16 << 20, min(64 << 20, 4 * block_bytes + (2 << 20))))
    return pltpu.CompilerParams(
        dimension_semantics=("parallel",) * ndims,
        vmem_limit_bytes=lim,
    )


# ----------------------------------------------------------------------------
# Pallas kernels
# ----------------------------------------------------------------------------
def _gemm_bn_act_kernel(x_ref, w_ref, s_ref, b_ref, o_ref, *, act):
    """o = act((x @ w) * scale + bias); bf16 MXU inputs (pre-cast outside),
    f32 accumulation, f32 epilogue, bf16 store."""
    y = jnp.dot(x_ref[...], w_ref[...], preferred_element_type=jnp.float32)
    y = y * s_ref[...] + b_ref[...]
    if act == "swish":
        y = y * jax.nn.sigmoid(y)          # sigmoid goes to the EUP slot
    o_ref[...] = y.astype(o_ref.dtype)


def gemm_bn_act(x, w, scale, bias, act="none"):
    """x:(M,K) bf16, w:(K,N) bf16, scale/bias:(N,) f32 -> (M,N) bf16 lane-dense."""
    M, K = x.shape
    _, N = w.shape
    Mp = _round_up(M, 8)
    tm = min(1024, Mp)                      # big M tiles amortize per-step cost
    Mp = _round_up(Mp, tm)
    if Mp != M:
        x = jnp.pad(x, ((0, Mp - M), (0, 0)))
    blk = tm * K * 2 + K * N * 2 + 2 * N * 4 + tm * N * 2
    cost = pl.CostEstimate(
        flops=int(2 * Mp * K * N + 4 * Mp * N),
        transcendentals=int(Mp * N if act == "swish" else 0),
        bytes_accessed=int(Mp * K * 2 + K * N * 2 + 2 * N * 4 + Mp * N * 2))
    out = pl.pallas_call(
        functools.partial(_gemm_bn_act_kernel, act=act),
        out_shape=jax.ShapeDtypeStruct((Mp, N), jnp.bfloat16),
        grid=(Mp // tm,),
        in_specs=[
            pl.BlockSpec((tm, K), lambda i: (i, 0)),
            pl.BlockSpec((K, N), lambda i: (0, 0)),
            pl.BlockSpec((1, N), lambda i: (0, 0)),
            pl.BlockSpec((1, N), lambda i: (0, 0)),
        ],
        out_specs=pl.BlockSpec((tm, N), lambda i: (i, 0)),
        compiler_params=_cparams(blk),
        cost_estimate=cost,
    )(x, w, scale.reshape(1, N), bias.reshape(1, N))
    return out[:M] if Mp != M else out


def _dw_se_kernel(x_ref, w_ref, s_ref, b_ref, wr_ref, br_ref, we_ref, be_ref,
                  o_ref, g_ref, *, stride, ho, wo, c):
    """Depthwise 3x3 + folded BN + swish + fused SE (GAP -> FC -> swish -> FC
    -> sigmoid).  Input is space-to-depth phased so strided taps are plain
    contiguous slices; emits the activation and the (1,C) SE gate."""
    x = x_ref[0]                                   # (Hq, Wq, s*s*C) bf16
    w = w_ref[...]                                 # (9, 1, 1, C) f32
    acc = jnp.zeros((ho, wo, c), jnp.float32)
    for kh in range(3):
        p, a = kh % stride, kh // stride
        for kw in range(3):
            q, b = kw % stride, kw // stride
            ph = p * stride + q
            tap = x[a:a + ho, b:b + wo, ph * c:(ph + 1) * c]
            acc = acc + tap * w[kh * 3 + kw]       # bf16 tap * f32 w -> f32 MAC
    y = acc * s_ref[0][None, None, :] + b_ref[0][None, None, :]
    y = y * jax.nn.sigmoid(y)                      # swish (f32, EUP)
    o_ref[0] = y.astype(o_ref.dtype)               # bf16 activation out
    # fused squeeze-excite gate: no second HBM read of the activation.
    pooled = jnp.mean(y, axis=(0, 1), keepdims=True)[0]                 # (1,C)
    h = jnp.dot(pooled, wr_ref[...], preferred_element_type=jnp.float32)
    h = h + br_ref[...]
    h = h * jax.nn.sigmoid(h)
    g = jnp.dot(h, we_ref[...], preferred_element_type=jnp.float32)
    g = g + be_ref[...]
    g_ref[0] = jax.nn.sigmoid(g).astype(g_ref.dtype)                    # (1,C)


def _same_pad(x, k, s):
    """TF-style SAME padding on NHWC."""
    _, H, W, _ = x.shape

    def pads(d):
        out = -(-d // s)
        total = max((out - 1) * s + k - d, 0)
        return (total // 2, total - total // 2)

    return jnp.pad(x, ((0, 0), pads(H), pads(W), (0, 0)))


def dwconv_se(x, w, scale, bias, wr, br, we, be, stride):
    """x:(N,H,W,C) bf16 -> (activation (N,ho,wo,C) bf16, SE gate (N,1,C) f32)."""
    N, H, W, C = x.shape
    ho, wo = -(-H // stride), -(-W // stride)
    xp = _same_pad(x, 3, stride)
    Hp, Wp = xp.shape[1], xp.shape[2]
    Hq, Wq = -(-Hp // stride), -(-Wp // stride)
    xp = jnp.pad(xp, ((0, 0), (0, Hq * stride - Hp), (0, Wq * stride - Wp), (0, 0)))
    # phased[n,i,j,(p*s+q)*C + c] == xp[n, s*i+p, s*j+q, c]
    phased = (xp.reshape(N, Hq, stride, Wq, stride, C)
                .transpose(0, 1, 3, 2, 4, 5)
                .reshape(N, Hq, Wq, stride * stride * C))
    Ch = wr.shape[1]
    kernel = functools.partial(_dw_se_kernel, stride=stride, ho=ho, wo=wo, c=C)
    blk = (Hq * Wq * stride * stride * C * 2 + 9 * C * 4 + 2 * C * 4
           + 2 * C * Ch * 4 + (Ch + 2 * C) * 4 + ho * wo * C * 2 + C * 4)
    cost = pl.CostEstimate(
        flops=int(N * (ho * wo * C * 22 + 4 * C * Ch)),
        transcendentals=int(N * (ho * wo * C + C + Ch)),
        bytes_accessed=int(N * (Hq * Wq * stride * stride * C * 2
                                + ho * wo * C * 2 + C * 4)
                           + 9 * C * 4 + 2 * C * Ch * 4 + (3 * C + Ch) * 4))
    y, gate = pl.pallas_call(
        kernel,
        out_shape=(jax.ShapeDtypeStruct((N, ho, wo, C), x.dtype),
                   jax.ShapeDtypeStruct((N, 1, C), jnp.float32)),
        grid=(N,),
        in_specs=[
            pl.BlockSpec((1, Hq, Wq, stride * stride * C), lambda n: (n, 0, 0, 0)),
            pl.BlockSpec((9, 1, 1, C), lambda n: (0, 0, 0, 0)),
            pl.BlockSpec((1, C), lambda n: (0, 0)),
            pl.BlockSpec((1, C), lambda n: (0, 0)),
            pl.BlockSpec((C, Ch), lambda n: (0, 0)),
            pl.BlockSpec((1, Ch), lambda n: (0, 0)),
            pl.BlockSpec((Ch, C), lambda n: (0, 0)),
            pl.BlockSpec((1, C), lambda n: (0, 0)),
        ],
        out_specs=(pl.BlockSpec((1, ho, wo, C), lambda n: (n, 0, 0, 0)),
                   pl.BlockSpec((1, 1, C), lambda n: (n, 0, 0))),
        compiler_params=_cparams(blk),
        cost_estimate=cost,
    )(phased, w, scale.reshape(1, C), bias.reshape(1, C),
      wr, br.reshape(1, Ch), we, be.reshape(1, C))
    return y, gate


def _proj_kernel(x_ref, g_ref, w_ref, s_ref, b_ref, *rest):
    """o = x @ (gate-folded W) * bn_scale + bn_bias [+ residual].  The SE gate
    is folded into the projection weight (C*Cout multiplies) instead of
    scaling the (rows, C) activation."""
    if len(rest) == 2:
        r_ref, o_ref = rest
    else:
        r_ref = None
        (o_ref,) = rest
    wg = (w_ref[...] * g_ref[0]).astype(jnp.bfloat16)   # (C,Cout) * (C,1) gate
    y = jnp.dot(x_ref[0], wg, preferred_element_type=jnp.float32)
    y = y * s_ref[...] + b_ref[...]
    if r_ref is not None:
        y = y + r_ref[0]                                # bf16 residual -> f32 add
    o_ref[0] = y.astype(o_ref.dtype)


def proj_gemm_gate_res(x, gate, w, scale, bias, residual=None):
    """x:(N,H,W,C) bf16, gate:(N,1,C) f32, w:(C,Cout) bf16 -> (N,H,W,Cout) bf16."""
    N, H, W, C = x.shape
    Cout = w.shape[1]
    HW = H * W
    tr = HW
    for cand in (512, 256, 128, 64, 32):                # row tiles: more grid
        if HW % cand == 0 and HW // cand >= 2:          # steps for v7x megacore
            tr = cand
            break
    gate_col = jnp.transpose(gate, (0, 2, 1))           # (N, C, 1) column form
    args = [x.reshape(N, HW, C), gate_col, w,
            scale.reshape(1, Cout), bias.reshape(1, Cout)]
    in_specs = [
        pl.BlockSpec((1, tr, C), lambda n, r: (n, r, 0)),
        pl.BlockSpec((1, C, 1), lambda n, r: (n, 0, 0)),
        pl.BlockSpec((C, Cout), lambda n, r: (0, 0)),
        pl.BlockSpec((1, Cout), lambda n, r: (0, 0)),
        pl.BlockSpec((1, Cout), lambda n, r: (0, 0)),
    ]
    if residual is not None:
        args.append(residual.reshape(N, HW, Cout))
        in_specs.append(pl.BlockSpec((1, tr, Cout), lambda n, r: (n, r, 0)))
    nres = 2 if residual is not None else 1
    blk = tr * C * 2 + C * 4 + C * Cout * 2 + 2 * Cout * 4 + tr * Cout * 2 * nres
    cost = pl.CostEstimate(
        flops=int(N * (2 * HW * C * Cout + C * Cout + 3 * HW * Cout)),
        transcendentals=0,
        bytes_accessed=int(N * HW * (C + Cout * nres) * 2
                           + C * Cout * 2 + N * C * 4 + 2 * Cout * 4))
    y = pl.pallas_call(
        _proj_kernel,
        out_shape=jax.ShapeDtypeStruct((N, HW, Cout), x.dtype),
        grid=(N, HW // tr),
        in_specs=in_specs,
        out_specs=pl.BlockSpec((1, tr, Cout), lambda n, r: (n, r, 0)),
        compiler_params=_cparams(blk, ndims=2),
        cost_estimate=cost,
    )(*args)
    return y.reshape(N, H, W, Cout)


def _head_gap_kernel(x_ref, w_ref, s_ref, b_ref, o_ref):
    """Head 1x1 conv + folded BN + swish + global average pool fused: the full
    head activation never leaves VMEM."""
    y = jnp.dot(x_ref[0], w_ref[...], preferred_element_type=jnp.float32)
    y = y * s_ref[...] + b_ref[...]
    y = y * jax.nn.sigmoid(y)
    o_ref[0] = jnp.mean(y, axis=0, keepdims=True).astype(o_ref.dtype)


def head_conv_gap(x, w, scale, bias):
    """x:(N,H,W,C) bf16 -> pooled features (N, Cout) f32."""
    N, H, W, C = x.shape
    Cout = w.shape[1]
    HW = H * W
    blk = HW * C * 2 + C * Cout * 2 + 2 * Cout * 4 + Cout * 4
    cost = pl.CostEstimate(
        flops=int(N * (2 * HW * C * Cout + 5 * HW * Cout)),
        transcendentals=int(N * HW * Cout),
        bytes_accessed=int(N * HW * C * 2 + C * Cout * 2 + 2 * Cout * 4
                           + N * Cout * 4))
    y = pl.pallas_call(
        _head_gap_kernel,
        out_shape=jax.ShapeDtypeStruct((N, 1, Cout), jnp.float32),
        grid=(N,),
        in_specs=[
            pl.BlockSpec((1, HW, C), lambda n: (n, 0, 0)),
            pl.BlockSpec((C, Cout), lambda n: (0, 0)),
            pl.BlockSpec((1, Cout), lambda n: (0, 0)),
            pl.BlockSpec((1, Cout), lambda n: (0, 0)),
        ],
        out_specs=pl.BlockSpec((1, 1, Cout), lambda n: (n, 0, 0)),
        compiler_params=_cparams(blk),
        cost_estimate=cost,
    )(x.reshape(N, HW, C), w, scale.reshape(1, Cout), bias.reshape(1, Cout))
    return y.reshape(N, Cout)


# ----------------------------------------------------------------------------
# Glue (layout / padding / stem im2col) in plain JAX
# ----------------------------------------------------------------------------
def _im2col(xp, k, stride):
    N, Hp, Wp, C = xp.shape
    Ho = (Hp - k) // stride + 1
    Wo = (Wp - k) // stride + 1
    patches = [xp[:, i:i + stride * Ho:stride, j:j + stride * Wo:stride, :]
               for i in range(k) for j in range(k)]
    p = jnp.stack(patches, axis=3)                       # (N, Ho, Wo, k*k, C)
    return p.reshape(N * Ho * Wo, k * k * C), (N, Ho, Wo)


def stem_conv_bn_swish(x, w_gemm, scale, bias, stride=2):
    """3x3 full conv via bf16 im2col (K padded to 128 -> lane-dense LHS) +
    fused lane-dense Pallas GEMM + folded BN + swish."""
    # TODO(synk): replace im2col with an in-kernel windowed conv (halo DMA)
    # for full-resolution inputs to avoid the 9x patch materialization in HBM.
    cols, (N, Ho, Wo) = _im2col(_same_pad(x, 3, stride), 3, stride)
    Kp = w_gemm.shape[0]
    if cols.shape[1] != Kp:
        cols = jnp.pad(cols, ((0, 0), (0, Kp - cols.shape[1])))
    y = gemm_bn_act(cols, w_gemm, scale, bias, "swish")
    return y.reshape(N, Ho, Wo, -1)


def conv1x1_bn_act(x, w, scale, bias, act):
    N, H, W, C = x.shape
    y = gemm_bn_act(x.reshape(N * H * W, C), w, scale, bias, act)
    return y.reshape(N, H, W, -1)


def mbconv(x, p, expand_ratio, stride):
    inputs = x
    if expand_ratio != 1:
        x = conv1x1_bn_act(x, p["expand_w"], p["bn0_s"], p["bn0_b"], "swish")
    # TODO(synk): at real resolutions add an H-tile grid axis here (with
    # accumulated SE pooling across tiles) so blocks fit v7x's 64 MiB VMEM and
    # both TensorCores get >=8 grid steps; also consider fp8 1x1-conv weights
    # and 256-wide N tiles for the full-size channel counts on v6e/v7x.
    x, gate = dwconv_se(x, p["dw_w"], p["bn1_s"], p["bn1_b"],
                        p["se_r_w"], p["se_r_b"], p["se_e_w"], p["se_e_b"],
                        stride)
    residual = inputs if (p["residual"] and stride == 1) else None
    x = proj_gemm_gate_res(x, gate, p["proj_w"], p["bn2_s"], p["bn2_b"], residual)
    return x


# ----------------------------------------------------------------------------
# Parameter init (deterministic synthetic weights, channel-padded to 128)
# ----------------------------------------------------------------------------
def _bn_fold(key, c, eps=1e-3):
    k1, k2, k3, k4 = jax.random.split(key, 4)
    gamma = 1.0 + 0.1 * jax.random.normal(k1, (c,), jnp.float32)
    beta = 0.1 * jax.random.normal(k2, (c,), jnp.float32)
    mean = 0.1 * jax.random.normal(k3, (c,), jnp.float32)
    var = 1.0 + 0.1 * jnp.abs(jax.random.normal(k4, (c,), jnp.float32))
    scale = gamma / jnp.sqrt(var + eps)
    bias = beta - mean * scale
    # padded lanes: scale=1, bias=0 -> padded outputs stay exactly zero.
    scale = jnp.concatenate([scale, jnp.ones((LANE - c,), jnp.float32)])
    bias = jnp.concatenate([bias, jnp.zeros((LANE - c,), jnp.float32)])
    return scale, bias


def _dense_w(key, cin, cout, cin_p=LANE, cout_p=LANE):
    w = jax.random.normal(key, (cin, cout), jnp.float32) / math.sqrt(cin)
    w = jnp.pad(w, ((0, cin_p - cin), (0, cout_p - cout)))
    return w.astype(jnp.bfloat16)                       # pre-cast MXU weight


def _stem_w(key, cin, cout, cin_p, cout_p, k_pad=LANE):
    w = jax.random.normal(key, (3, 3, cin, cout), jnp.float32) / math.sqrt(9 * cin)
    w = jnp.pad(w, ((0, 0), (0, 0), (0, cin_p - cin), (0, cout_p - cout)))
    w = w.reshape(9 * cin_p, cout_p)
    w = jnp.pad(w, ((0, k_pad - 9 * cin_p), (0, 0)))    # K 72 -> 128 lane-dense
    return w.astype(jnp.bfloat16)


def _dw_w(key, c):
    w = jax.random.normal(key, (9, c), jnp.float32) / 3.0
    w = jnp.pad(w, ((0, 0), (0, LANE - c)))
    return w.reshape(9, 1, 1, LANE)                     # pre-shaped, f32


def init_params(key, image_size=16, cin=3, stem_c=16, b1_c=16, b2_exp=4,
                b2_out=24, head_c=48, se_sq=4):
    ks = iter(jax.random.split(key, 32))
    exp_c = b1_c * b2_exp
    cin_p = 8                                   # pad stem Cin to sublane width
    params = {
        "image_size": image_size,
        "cin": cin,
        "cin_pad": cin_p,
        "head_c": head_c,
        "stem_w": _stem_w(next(ks), cin, stem_c, cin_p, LANE),
    }
    params["stem_bn_s"], params["stem_bn_b"] = _bn_fold(next(ks), stem_c)
    params["head_w"] = _dense_w(next(ks), b2_out, head_c)
    params["head_bn_s"], params["head_bn_b"] = _bn_fold(next(ks), head_c)

    def se_params(c):
        wr = jnp.pad(jax.random.normal(next(ks), (c, se_sq), jnp.float32)
                     / math.sqrt(c), ((0, LANE - c), (0, LANE - se_sq)))
        br = jnp.pad(0.1 * jax.random.normal(next(ks), (se_sq,), jnp.float32),
                     (0, LANE - se_sq))
        we = jnp.pad(jax.random.normal(next(ks), (se_sq, c), jnp.float32)
                     / math.sqrt(se_sq), ((0, LANE - se_sq), (0, LANE - c)))
        # padded expand-bias lanes forced very negative so padded gate lanes
        # are ~0 rather than sigmoid(0)=0.5 (robustness fix from the review).
        be = jnp.concatenate(
            [0.1 * jax.random.normal(next(ks), (c,), jnp.float32),
             jnp.full((LANE - c,), -30.0, jnp.float32)])
        return wr, br, we, be

    b1 = {"residual": True}
    b1["dw_w"] = _dw_w(next(ks), b1_c)
    b1["bn1_s"], b1["bn1_b"] = _bn_fold(next(ks), b1_c)
    b1["se_r_w"], b1["se_r_b"], b1["se_e_w"], b1["se_e_b"] = se_params(b1_c)
    b1["proj_w"] = _dense_w(next(ks), b1_c, b1_c)
    b1["bn2_s"], b1["bn2_b"] = _bn_fold(next(ks), b1_c)
    params["block1"] = b1

    b2 = {"residual": False}
    b2["expand_w"] = _dense_w(next(ks), b1_c, exp_c)
    b2["bn0_s"], b2["bn0_b"] = _bn_fold(next(ks), exp_c)
    b2["dw_w"] = _dw_w(next(ks), exp_c)
    b2["bn1_s"], b2["bn1_b"] = _bn_fold(next(ks), exp_c)
    b2["se_r_w"], b2["se_r_b"], b2["se_e_w"], b2["se_e_b"] = se_params(exp_c)
    b2["proj_w"] = _dense_w(next(ks), exp_c, b2_out)
    b2["bn2_s"], b2["bn2_b"] = _bn_fold(next(ks), b2_out)
    params["block2"] = b2
    return params


# ----------------------------------------------------------------------------
# Forward (mirrors EffecientNet.forward: backbone -> pooled 1x1 -> [B, C])
# ----------------------------------------------------------------------------
def efficientnet_forward(x_nchw, params):
    assert x_nchw.shape[2] == params["image_size"] and \
        x_nchw.shape[3] == params["image_size"], \
        f"model image size={params['image_size']}"
    x = jnp.transpose(x_nchw, (0, 2, 3, 1)).astype(jnp.bfloat16)  # NCHW -> NHWC
    x = jnp.pad(x, ((0, 0), (0, 0), (0, 0),
                    (0, params["cin_pad"] - params["cin"])))      # Cin 3 -> 8

    # stem: 3x3 s2 conv + BN + swish (im2col GEMM, lane-dense K and N)
    x = stem_conv_bn_swish(x, params["stem_w"], params["stem_bn_s"],
                           params["stem_bn_b"], stride=2)
    # MBConv blocks
    x = mbconv(x, params["block1"], expand_ratio=1, stride=1)
    x = mbconv(x, params["block2"], expand_ratio=4, stride=2)
    # head 1x1 conv + BN + swish fused with the global average pool
    outs = head_conv_gap(x, params["head_w"], params["head_bn_s"],
                         params["head_bn_b"])                     # (B, 128) f32
    return outs[:, :params["head_c"]]                             # (B, head_c)

# TODO(synk): the real module loads arch-dependent pretrained weights and
#             stacks 16+ MBConv stages; this version keeps the exact per-block
#             semantics with a reduced, deterministic configuration.


if __name__ == "__main__":
    key = jax.random.PRNGKey(0)
    x = jax.random.normal(key, (2, 3, 16, 16), jnp.float32)       # NCHW input
    params = init_params(jax.random.PRNGKey(42), image_size=16)
    out = efficientnet_forward(x, params)
    out = jax.block_until_ready(out)
    assert out.shape == (2, 48), out.shape
    assert bool(jnp.all(jnp.isfinite(out)))
    print("KERNEL_OK")
</pallas_src>

<mosaic_0001>
module attributes {stable_mosaic.version = 11 : i64} {
  func.func @_gemm_bn_act_kernel(%arg0: i32, %arg1: memref<128x128xbf16, #tpu.memory_space<vmem>>, %arg2: memref<128x128xbf16, #tpu.memory_space<vmem>>, %arg3: memref<1x128xf32, #tpu.memory_space<vmem>>, %arg4: memref<1x128xf32, #tpu.memory_space<vmem>>, %arg5: memref<128x128xbf16, #tpu.memory_space<vmem>>) attributes {dimension_semantics = [#tpu.dimension_semantics<parallel>], iteration_bounds = array<i64: 1>, scalar_prefetch = 0 : i64, scratch_operands = 0 : i64, tpu.core_type = #tpu.core_type<tc>, window_params = [{transform_indices = @transform_0, window_bounds = array<i64: 128, 128>}, {pipeline_mode = #tpu.pipeline_mode<synchronous>, transform_indices = @transform_1, window_bounds = array<i64: 128, 128>}, {pipeline_mode = #tpu.pipeline_mode<synchronous>, transform_indices = @transform_2, window_bounds = array<i64: 1, 128>}, {pipeline_mode = #tpu.pipeline_mode<synchronous>, transform_indices = @transform_3, window_bounds = array<i64: 1, 128>}, {transform_indices = @transform_4, window_bounds = array<i64: 128, 128>}]} {
    %c0 = arith.constant 0 : index
    %c0_0 = arith.constant 0 : index
    %0 = vector.load %arg1[%c0, %c0_0] : memref<128x128xbf16, #tpu.memory_space<vmem>>, vector<128x128xbf16>
    %c0_1 = arith.constant 0 : index
    %c0_2 = arith.constant 0 : index
    %1 = vector.load %arg2[%c0_1, %c0_2] : memref<128x128xbf16, #tpu.memory_space<vmem>>, vector<128x128xbf16>
    %cst = arith.constant dense<0.000000e+00> : vector<128x128xf32>
    %2 = tpu.matmul %0, %1, %cst {dimension_numbers = #tpu.dot_dimension_numbers<[1], [0], [0], [1], [0, 0, 1, 1], [], []>} : vector<128x128xbf16>, vector<128x128xbf16>, vector<128x128xf32> -> vector<128x128xf32>
    %c0_3 = arith.constant 0 : index
    %c0_4 = arith.constant 0 : index
    %3 = vector.load %arg3[%c0_3, %c0_4] : memref<1x128xf32, #tpu.memory_space<vmem>>, vector<1x128xf32>
    %4 = vector.broadcast %3 : vector<1x128xf32> to vector<128x128xf32>
    %5 = arith.mulf %2, %4 : vector<128x128xf32>
    %c0_5 = arith.constant 0 : index
    %c0_6 = arith.constant 0 : index
    %6 = vector.load %arg4[%c0_5, %c0_6] : memref<1x128xf32, #tpu.memory_space<vmem>>, vector<1x128xf32>
    %7 = vector.broadcast %6 : vector<1x128xf32> to vector<128x128xf32>
    %8 = arith.addf %5, %7 : vector<128x128xf32>
    %9 = arith.negf %8 : vector<128x128xf32>
    %10 = math.exp %9 : vector<128x128xf32>
    %cst_7 = arith.constant 1.000000e+00 : f32
    %11 = vector.broadcast %cst_7 : f32 to vector<128x128xf32>
    %12 = arith.addf %11, %10 : vector<128x128xf32>
    %13 = arith.divf %11, %12 : vector<128x128xf32>
    %14 = arith.mulf %8, %13 : vector<128x128xf32>
    %15 = arith.truncf %14 : vector<128x128xf32> to vector<128x128xbf16>
    %c0_8 = arith.constant 0 : index
    %c0_9 = arith.constant 0 : index
    %16 = vector.load %arg5[%c0_8, %c0_9] : memref<128x128xbf16, #tpu.memory_space<vmem>>, vector<128x128xbf16>
    tpu.vector_store %arg5[%c0_8, %c0_9], %15 {strides = array<i32>} : memref<128x128xbf16, #tpu.memory_space<vmem>>, vector<128x128xbf16>,
    return
  }
  func.func @transform_0(%arg0: i32) -> (i32, i32) {
    %c0_i32 = arith.constant 0 : i32
    %c0_i32_0 = arith.constant 0 : i32
    return %arg0, %c0_i32 : i32, i32
  }
  func.func @transform_1(%arg0: i32) -> (i32, i32) {
    %c0_i32 = arith.constant 0 : i32
    %c0_i32_0 = arith.constant 0 : i32
    %c0_i32_1 = arith.constant 0 : i32
    return %c0_i32, %c0_i32_0 : i32, i32
  }
  func.func @transform_2(%arg0: i32) -> (i32, i32) {
    %c0_i32 = arith.constant 0 : i32
    %c0_i32_0 = arith.constant 0 : i32
    %c0_i32_1 = arith.constant 0 : i32
    return %c0_i32, %c0_i32_0 : i32, i32
  }
  func.func @transform_3(%arg0: i32) -> (i32, i32) {
    %c0_i32 = arith.constant 0 : i32
    %c0_i32_0 = arith.constant 0 : i32
    %c0_i32_1 = arith.constant 0 : i32
    return %c0_i32, %c0_i32_0 : i32, i32
  }
  func.func @transform_4(%arg0: i32) -> (i32, i32) {
    %c0_i32 = arith.constant 0 : i32
    %c0_i32_0 = arith.constant 0 : i32
    return %arg0, %c0_i32 : i32, i32
  }
}

</mosaic_0001>

<bundles_post_ra>
// kernel: tpu_custom_call.1
= control target key start
LH: loop header
LB: loop body
LE: loop exit
PB: predicated region body
PF: predicated region fallthrough
CT: control target
= control target key end

     0   :  { %9 = vsyncpa [#allocation3], 0  ;;  %s1010_s0 = inlined_call_operand.hbm [shape: bf16[128,128], index: 0, kind: input, shape index: {}]   ;;  %s1011_s1 = inlined_call_operand.hbm [shape: bf16[128,128], index: 1, kind: input, shape index: {}]   ;;  %s1012_s2 = inlined_call_operand.vmem [shape: f32[1,128], index: 2, kind: input, shape index: {}]   ;;  %s1013_s3 = inlined_call_operand.vmem [shape: f32[1,128], index: 3, kind: input, shape index: {}]   ;;  %s1014_s4 = inlined_call_operand.hbm [shape: bf16[128,128], index: 4, kind: output, shape index: {}]  }
   0x1   :  { %10 = vsyncpa [#allocation6], 0 }
   0x2   :  { %11 = vsyncpa [#allocation4], 0  ;;  %s856_s15 = smov [#allocation2]  }
   0x3   :  { %s17_s16 = sshll.u32 %s856_s15, 4  ;;  %s18_s16 = int_to_ptr.vmem [resolvable:$true] %s17_s16 }
   0x4   :  { %s798_s17 = scalar_lea.vmem %s18_s16, 1024  ;;  %p803_p1 = scmp.lt.s32.totalorder %s18_s16, %s18_s16 }
   0x5   :  { %p799_p0 = scmp.ne.s32.totalorder %s18_s16, %s798_s17  ;;  %p804_p2 = scmp.lt.s32.totalorder %s798_s17, %s798_s17 }
   0x7   :  { %p805_p3 = por %p804_p2, %p803_p1 }
   0x9   :  { %p806_p4 = pnand %p805_p3, %p799_p0 }
   0xb   :  { %809 = shalt.err (!%p806_p4)
}
   0xc   :  { %s857_s18 = smov 64   ;;  %s858_s19 = smov 4  }
   0xd   :  { %23 = dma.hbm_to_vmem [thread:$0]  %s1010_s0, 1024, %s18_s16, [#allocation3], %s857_s18, %s857_s18, %s858_s19  }
   0xe   :  { %s859_s22 = smov [#allocation5]  }
   0xf   :  { %s29_s23 = sshll.u32 %s859_s22, 4  ;;  %s30_s23 = int_to_ptr.vmem [resolvable:$true] %s29_s23 }
  0x10   :  { %s818_s24 = scalar_lea.vmem %s30_s23, 1024  ;;  %p823_p6 = scmp.lt.s32.totalorder %s30_s23, %s30_s23 }
  0x11   :  { %p819_p5 = scmp.ne.s32.totalorder %s30_s23, %s818_s24  ;;  %p824_p7 = scmp.lt.s32.totalorder %s818_s24, %s818_s24 }
  0x13   :  { %p825_p8 = por %p824_p7, %p823_p6 }
  0x15   :  { %p826_p9 = pnand %p825_p8, %p819_p5 }
  0x17   :  { %829 = shalt.err (!%p826_p9)
}
  0x18   :  { %35 = dma.hbm_to_vmem [thread:$0]  %s1011_s1, 1024, %s30_s23, [#allocation6], %s857_s18, %s857_s18, %s858_s19  }
  0x19   :  { %850 = dma.done.wait [#allocation3], 1024  }
  0x1a   :  { %851 = vsyncadd [#allocation3], 4294966272 }
  0x1b   :  { %852 = dma.done.wait [#allocation6], 1024  }
  0x1c   :  { %853 = vsyncadd [#allocation6], 4294966272  ;;  %v710_v0 = vld [vmem:[#allocation5 + $0x38] sm:$0xff]   ;;  %v711_v1 = vld [vmem:[#allocation5 + $0x30] sm:$0xff]  }
  0x1d   :  { %657 = vmatprep.subr.bf16.mxu0 %v710_v0  ;;  %689 = vmatprep.subr.bf16.mxu1 %v710_v0  ;;  %v712_v2 = vld [vmem:[#allocation5 + $0x28] sm:$0xff]   ;;  %v713_v3 = vld [vmem:[#allocation5 + $0x20] sm:$0xff]   ;;  %v714_v6 = vld [vmem:[#allocation5 + $0x18] sm:$0xff]  }
  0x1e   :  { %658 = vmatpush3.bf16.msra.mxu0 %v710_v0  ;;  %697 = vmatpush3.bf16.msra.mxu1 %v710_v0  ;;  %v718_v4 = vld [vmem:[#allocation2] sm:$0xff]   ;;  %v715_v7 = vld [vmem:[#allocation5 + $0x10] sm:$0xff]   ;;  %v716_v8 = vld [vmem:[#allocation5 + $0x8] sm:$0xff]  }
  0x1f   :  { %659 = vmatprep.subr.bf16.mxu0 %v711_v1  ;;  %690 = vmatprep.subr.bf16.mxu1 %v711_v1  ;;  %v719_v5 = vld [vmem:[#allocation2 + $0x20] sm:$0xff]   ;;  %v720_v10 = vld [vmem:[#allocation2 + $0x8] sm:$0xff]   ;;  %v722_v12 = vld [vmem:[#allocation2 + $0x10] sm:$0xff]  }
  0x20   :  { %673 = vmatprep.mubr.bf16.mxu0 %v718_v4  ;;  %681 = vmatprep.mubr.bf16.mxu1 %v719_v5  ;;  %v717_v9 = vld [vmem:[#allocation5] sm:$0xff]   ;;  %v721_v11 = vld [vmem:[#allocation2 + $0x28] sm:$0xff]   ;;  %v723_v13 = vld [vmem:[#allocation2 + $0x30] sm:$0xff]  }
  0x21   :  { %v724_v14 = vld [vmem:[#allocation2 + $0x18] sm:$0xff]   ;;  %v901_v16 = vld [vmem:[%s1012_s2] ss:$0 sm:$0xff]  ;;  %s860_s2 = smov [#allocation7]  }
  0x22   :  { %660 = vmatpush3.bf16.msra.mxu0 %v711_v1  ;;  %698 = vmatpush3.bf16.msra.mxu1 %v711_v1  ;;  %v725_v15 = vld [vmem:[#allocation2 + $0x38] sm:$0xff]   ;;  %v906_v18 = vld [vmem:[%s1013_s3] ss:$0 sm:$0xff]  ;;  %s515_s3 = sshll.u32 %s860_s2, 4  ;;  %s516_s3 = int_to_ptr.vmem [resolvable:$true] %s515_s3 }
  0x23   :  { %661 = vmatprep.subr.bf16.mxu0 %v712_v2  ;;  %691 = vmatprep.subr.bf16.mxu1 %v712_v2  ;;  %s830_s29 = scalar_lea.vmem %s516_s3, 1024  ;;  %p835_p11 = scmp.lt.s32.totalorder %s516_s3, %s516_s3 }
  0x24   :  { %p831_p10 = scmp.ne.s32.totalorder %s516_s3, %s830_s29  ;;  %p836_p12 = scmp.lt.s32.totalorder %s830_s29, %s830_s29 }
  0x26   :  { %662 = vmatpush3.bf16.msra.mxu0 %v712_v2  ;;  %699 = vmatpush3.bf16.msra.mxu1 %v712_v2  ;;  %p837_p13 = por %p836_p12, %p835_p11 }
  0x27   :  { %663 = vmatprep.subr.bf16.mxu0 %v713_v3  ;;  %692 = vmatprep.subr.bf16.mxu1 %v713_v3 }
  0x28   :  { %p838_p0 = pnand %p837_p13, %p831_p10 }
  0x2a   :  { %664 = vmatpush3.bf16.msra.mxu0 %v713_v3  ;;  %700 = vmatpush3.bf16.msra.mxu1 %v713_v3 }
  0x2b   :  { %665 = vmatprep.subr.bf16.mxu0 %v714_v6  ;;  %693 = vmatprep.subr.bf16.mxu1 %v714_v6 }
  0x2e   :  { %666 = vmatpush3.bf16.msra.mxu0 %v714_v6  ;;  %701 = vmatpush3.bf16.msra.mxu1 %v714_v6 }
  0x2f   :  { %667 = vmatprep.subr.bf16.mxu0 %v715_v7  ;;  %694 = vmatprep.subr.bf16.mxu1 %v715_v7 }
  0x32   :  { %668 = vmatpush3.bf16.msra.mxu0 %v715_v7  ;;  %702 = vmatpush3.bf16.msra.mxu1 %v715_v7 }
  0x33   :  { %669 = vmatprep.subr.bf16.mxu0 %v716_v8  ;;  %695 = vmatprep.subr.bf16.mxu1 %v716_v8 }
  0x36   :  { %670 = vmatpush3.bf16.msra.mxu0 %v716_v8  ;;  %703 = vmatpush3.bf16.msra.mxu1 %v716_v8 }
  0x37   :  { %671 = vmatprep.subr.bf16.mxu0 %v717_v9  ;;  %696 = vmatprep.subr.bf16.mxu1 %v717_v9 }
  0x3a   :  { %672 = vmatpush3.bf16.msra.mxu0 %v717_v9  ;;  %704 = vmatpush3.bf16.msra.mxu1 %v717_v9 }
  0x3d   :  { %674 = vmatmul.mubr.bf16.vlgmr.msra.gmra.mxu0 %v720_v10  ;;  %682 = vmatmul.mubr.bf16.vlgmr.msra.gmra.mxu1 %v721_v11 }
  0x3e   :  { %677 = vmatprep.mubr.bf16.mxu0 %v722_v12  ;;  %685 = vmatprep.mubr.bf16.mxu1 %v723_v13 }
  0x45   :  { %678 = vmatmul.mubr.bf16.gmra.mxu0 %v724_v14  ;;  %686 = vmatmul.mubr.bf16.gmra.mxu1 %v725_v15 }
  0xfd   :  { %v675_v17 = vpop.f32.mrf.mxu0  ;;  %v683_v19 = vpop.f32.mrf.mxu1 }
  0xfe   :  { %v281_v20 = vmul.f32 %v675_v17, %v901_v16  ;;  %v289_v21 = vmul.f32 %v683_v19, %v901_v16 }
  0xff   :  { %v209_v22 = vpop.f32.mrf.mxu0  ;;  %v241_v23 = vpop.f32.mrf.mxu1 }
 0x100   :  { %v911_v24 = vadd.f32 %v906_v18, %v281_v20  ;;  %v914_v25 = vadd.f32 %v906_v18, %v289_v21  ;;  %v279_v26 = vmul.f32 %v901_v16, %v209_v22  ;;  %v287_v27 = vmul.f32 %v901_v16, %v241_v23 }
 0x101   :  { %v676_v28 = vpop.f32.mrf.mxu0  ;;  %v684_v29 = vpop.f32.mrf.mxu1 }
 0x102   :  { %v548_v30 = vmul.f32 -1.442695, %v911_v24  ;;  %v556_v31 = vmul.f32 -1.442695, %v914_v25  ;;  %v921_v32 = vadd.f32 %v906_v18, %v279_v26  ;;  %v924_v33 = vadd.f32 %v906_v18, %v287_v27 }
 0x103   :  { %v282_v34 = vmul.f32 %v676_v28, %v901_v16  ;;  %v290_v35 = vmul.f32 %v684_v29, %v901_v16  ;;  %v212_v36 = vpop.f32.mrf.mxu0  ;;  %v244_v37 = vpop.f32.mrf.mxu1 }
 0x104   :  { %726 = vpow2.f32 %v548_v30  ;;  %v546_v38 = vmul.f32 -1.442695, %v921_v32  ;;  %v554_v39 = vmul.f32 -1.442695, %v924_v33  ;;  %v280_v40 = vmul.f32 %v901_v16, %v212_v36 }
 0x105   :  { %728 = vpow2.f32 %v556_v31  ;;  %v932_v41 = vadd.f32 %v906_v18, %v282_v34  ;;  %v935_v42 = vadd.f32 %v906_v18, %v290_v35  ;;  %v288_v43 = vmul.f32 %v901_v16, %v244_v37  ;;  %v679_v44 = vpop.f32.mrf.mxu0  ;;  %v687_v45 = vpop.f32.mrf.mxu1 }
 0x106   :  { %730 = vpow2.f32 %v546_v38  ;;  %v939_v46 = vadd.f32 %v906_v18, %v280_v40  ;;  %v285_v47 = vmul.f32 %v679_v44, %v901_v16  ;;  %v293_v48 = vmul.f32 %v687_v45, %v901_v16 }
 0x107   :  { %732 = vpow2.f32 %v554_v39  ;;  %v549_v49 = vmul.f32 -1.442695, %v932_v41  ;;  %v557_v50 = vmul.f32 -1.442695, %v935_v42  ;;  %v946_v51 = vadd.f32 %v906_v18, %v288_v43  ;;  %v225_v52 = vpop.f32.mrf.mxu0  ;;  %v257_v53 = vpop.f32.mrf.mxu1 }
 0x108   :  { %v547_v54 = vmul.f32 -1.442695, %v939_v46  ;;  %v950_v55 = vadd.f32 %v906_v18, %v285_v47  ;;  %v953_v56 = vadd.f32 %v906_v18, %v293_v48  ;;  %v283_v57 = vmul.f32 %v901_v16, %v225_v52 }
 0x109   :  { %734 = vpow2.f32 %v549_v49  ;;  %v555_v58 = vmul.f32 -1.442695, %v946_v51  ;;  %v291_v59 = vmul.f32 %v901_v16, %v257_v53  ;;  %v680_v60 = vpop.f32.mrf.mxu0  ;;  %v688_v61 = vpop.f32.mrf.mxu1 }
 0x10a   :  { %736 = vpow2.f32 %v557_v50  ;;  %v552_v62 = vmul.f32 -1.442695, %v950_v55  ;;  %v560_v63 = vmul.f32 -1.442695, %v953_v56  ;;  %v961_v0 = vadd.f32 %v906_v18, %v283_v57 }
 0x10b   :  { %738 = vpow2.f32 %v547_v54  ;;  %v964_v1 = vadd.f32 %v906_v18, %v291_v59  ;;  %v286_v2 = vmul.f32 %v680_v60, %v901_v16  ;;  %v294_v3 = vmul.f32 %v688_v61, %v901_v16  ;;  %v228_v4 = vpop.f32.mrf.mxu0  ;;  %v260_v5 = vpop.f32.mrf.mxu1 }
 0x10c   :  { %740 = vpow2.f32 %v555_v58  ;;  %v550_v6 = vmul.f32 -1.442695, %v961_v0  ;;  %v284_v7 = vmul.f32 %v901_v16, %v228_v4  ;;  %v292_v8 = vmul.f32 %v901_v16, %v260_v5 }
 0x10d   :  { %742 = vpow2.f32 %v552_v62  ;;  %v558_v9 = vmul.f32 -1.442695, %v964_v1  ;;  %v973_v10 = vadd.f32 %v906_v18, %v286_v2  ;;  %v976_v11 = vadd.f32 %v906_v18, %v294_v3 }
 0x10e   :  { %744 = vpow2.f32 %v560_v63  ;;  %v979_v12 = vadd.f32 %v906_v18, %v284_v7  ;;  %v985_v16 = vadd.f32 %v906_v18, %v292_v8 }
 0x10f   :  { %746 = vpow2.f32 %v550_v6  ;;  %v553_v13 = vmul.f32 -1.442695, %v973_v10  ;;  %v561_v14 = vmul.f32 -1.442695, %v976_v11 }
 0x110   :  { %748 = vpow2.f32 %v558_v9  ;;  %v551_v15 = vmul.f32 -1.442695, %v979_v12  ;;  %v559_v27 = vmul.f32 -1.442695, %v985_v16 }
 0x111   :  { %v727_v17 = vpop.eup %726  ;;  %750 = vpow2.f32 %v553_v13 }
 0x112   :  { %v729_v19 = vpop.eup %728  ;;  %v368_v20 = vadd.f32 1.0, %v727_v17  ;;  %752 = vpow2.f32 %v561_v14 }
 0x113   :  { %v731_v21 = vpop.eup %730  ;;  %v376_v22 = vadd.f32 1.0, %v729_v19  ;;  %754 = vpow2.f32 %v551_v15 }
 0x114   :  { %v733_v23 = vpop.eup %732  ;;  %756 = vrcp.f32 %v368_v20  ;;  %v366_v26 = vadd.f32 1.0, %v731_v21 }
 0x115   :  { %758 = vrcp.f32 %v376_v22  ;;  %v374_v28 = vadd.f32 1.0, %v733_v23 }
 0x116   :  { %v735_v29 = vpop.eup %734  ;;  %760 = vrcp.f32 %v366_v26 }
 0x117   :  { %v737_v30 = vpop.eup %736  ;;  %762 = vrcp.f32 %v374_v28  ;;  %v369_v18 = vadd.f32 1.0, %v735_v29 }
 0x118   :  { %v739_v31 = vpop.eup %738  ;;  %v377_v34 = vadd.f32 1.0, %v737_v30  ;;  %764 = vpow2.f32 %v559_v27 }
 0x119   :  { %v741_v35 = vpop.eup %740  ;;  %766 = vrcp.f32 %v369_v18  ;;  %v367_v36 = vadd.f32 1.0, %v739_v31 }
 0x11a   :  { %v743_v37 = vpop.eup %742  ;;  %768 = vrcp.f32 %v377_v34  ;;  %v375_v38 = vadd.f32 1.0, %v741_v35 }
 0x11b   :  { %v745_v39 = vpop.eup %744  ;;  %770 = vrcp.f32 %v367_v36  ;;  %v372_v40 = vadd.f32 1.0, %v743_v37 }
 0x11c   :  { %v747_v43 = vpop.eup %746  ;;  %772 = vrcp.f32 %v375_v38  ;;  %v380_v44 = vadd.f32 1.0, %v745_v39 }
 0x11d   :  { %v749_v45 = vpop.eup %748  ;;  %v370_v47 = vadd.f32 1.0, %v747_v43  ;;  %774 = vrcp.f32 %v372_v40 }
 0x11e   :  { %v751_v48 = vpop.eup %750  ;;  %776 = vrcp.f32 %v380_v44  ;;  %v378_v59 = vadd.f32 1.0, %v749_v45 }
 0x11f   :  { %v753_v49 = vpop.eup %752  ;;  %v373_v50 = vadd.f32 1.0, %v751_v48  ;;  %778 = vrcp.f32 %v370_v47 }
 0x120   :  { %v755_v52 = vpop.eup %754  ;;  %v381_v53 = vadd.f32 1.0, %v753_v49 }
 0x121   :  { %v757_v54 = vpop.eup %756  ;;  %780 = vrcp.f32 %v373_v50  ;;  %v371_v57 = vadd.f32 1.0, %v755_v52 }
 0x122   :  { %v759_v58 = vpop.eup %758  ;;  %782 = vrcp.f32 %v381_v53  ;;  %v416_v4 = vmul.f32 %v757_v54, %v911_v24 }
 0x123   :  { %v761_v60 = vpop.eup %760  ;;  %784 = vrcp.f32 %v371_v57  ;;  %v424_v7 = vmul.f32 %v759_v58, %v914_v25 }
 0x124   :  { %v763_v61 = vpop.eup %762  ;;  %786 = vrcp.f32 %v378_v59  ;;  %v414_v13 = vmul.f32 %v761_v60, %v921_v32 }
 0x125   :  { %v765_v62 = vpop.eup %764  ;;  %v422_v17 = vmul.f32 %v763_v61, %v924_v33 }
 0x126   :  { %v767_v63 = vpop.eup %766  ;;  %v379_v2 = vadd.f32 1.0, %v765_v62 }
 0x127   :  { %v769_v3 = vpop.eup %768  ;;  %v417_v5 = vmul.f32 %v767_v63, %v932_v41 }
 0x128   :  { %v771_v6 = vpop.eup %770  ;;  %v425_v8 = vmul.f32 %v769_v3, %v935_v42  ;;  %788 = vrcp.f32 %v379_v2 }
 0x129   :  { %v773_v9 = vpop.eup %772  ;;  %v602_v14 = vpack.c.bf16 %v417_v5, %v416_v4  ;;  %v415_v15 = vmul.f32 %v771_v6, %v939_v46 }
 0x12a   :  { %v622_v19 = vpack.c.bf16 %v425_v8, %v424_v7  ;;  %v423_v20 = vmul.f32 %v773_v9, %v946_v51  ;;  %v775_v24 = vpop.eup %774 }
 0x12b   :  { %634 = vst [vmem:[#allocation7 + $0x8] sm:$0xff] %v602_v14   ;;  %v597_v41 = vpack.c.bf16 %v415_v15, %v414_v13  ;;  %v777_v21 = vpop.eup %776  ;;  %v420_v32 = vmul.f32 %v775_v24, %v950_v55 }
 0x12c   :  { %638 = vst [vmem:[#allocation7 + $0x28] sm:$0xff] %v622_v19   ;;  %v617_v25 = vpack.c.bf16 %v423_v20, %v422_v17  ;;  %v779_v22 = vpop.eup %778  ;;  %v428_v33 = vmul.f32 %v777_v21, %v953_v56 }
 0x12d   :  { %598 = vst [vmem:[#allocation7] sm:$0xff] %v597_v41   ;;  %v418_v27 = vmul.f32 %v779_v22, %v961_v0 }
 0x12e   :  { %v781_v42 = vpop.eup %780  ;;  %637 = vst [vmem:[#allocation7 + $0x20] sm:$0xff] %v617_v25  }
 0x12f   :  { %v783_v23 = vpop.eup %782  ;;  %v421_v46 = vmul.f32 %v781_v42, %v973_v10 }
 0x130   :  { %v785_v26 = vpop.eup %784  ;;  %v429_v51 = vmul.f32 %v783_v23, %v976_v11 }
 0x131   :  { %v612_v28 = vpack.c.bf16 %v421_v46, %v420_v32  ;;  %v419_v29 = vmul.f32 %v785_v26, %v979_v12  ;;  %v787_v18 = vpop.eup %786 }
 0x132   :  { %v632_v30 = vpack.c.bf16 %v429_v51, %v428_v33  ;;  %v426_v55 = vmul.f32 %v787_v18, %v964_v1 }
 0x133   :  { %636 = vst [vmem:[#allocation7 + $0x18] sm:$0xff] %v612_v28   ;;  %v607_v31 = vpack.c.bf16 %v419_v29, %v418_v27 }
 0x134   :  { %640 = vst [vmem:[#allocation7 + $0x38] sm:$0xff] %v632_v30  }
 0x135   :  { %v789_v34 = vpop.eup %788  ;;  %635 = vst [vmem:[#allocation7 + $0x10] sm:$0xff] %v607_v31  }
 0x136   :  { %v427_v56 = vmul.f32 %v789_v34, %v985_v16 }
 0x138   :  { %v627_v10 = vpack.c.bf16 %v427_v56, %v426_v55 }
 0x13a   :  { %639 = vst [vmem:[#allocation7 + $0x30] sm:$0xff] %v627_v10  }
 0x13b   :  { %841 = shalt.err (!%p838_p0)
}
 0x13c   :  { %521 = dma.vmem_to_hbm [thread:$0]  %s516_s3, 1024, %s1014_s4, [#allocation4], %s857_s18, %s857_s18, %s858_s19  }
 0x13d   :  { %854 = dma.done.wait [#allocation4], 1024  }
 0x13e   :  { %855 = vsyncadd [#allocation4], 4294966272 }
 0x13f   :  { %525 = vsyncpa [#allocation3], 1 }
 0x140   :  { %526 = vsyncpa [#allocation6], 1 }
 0x141   :  { %527 = vsyncpa [#allocation4], 1 }

</bundles_post_ra>
